<compile_context>
chip_gen: v7x
topology: tpu7x:2x2x1
jax: 0.10.0
libtpu: 0.0.40
codegen_flags: <defaults>
</compile_context>

<pallas_src>
import math

import jax
import jax.numpy as jnp
from jax import lax
from jax.experimental import pallas as pl
from jax.experimental.pallas import tpu as pltpu

TEMPERATURE = 0.5          # attention temperature in the module
SPARSITY_THRESHOLD = 0.01  # sparsity_threshold in the module
EDGE_WEIGHT = 0.1          # VectorizedMessagePassing.edge_weight param (filled with 0.1)
LN_EPS = 1e-5              # nn.LayerNorm default eps


def _layer_norm(x, w, b):
    mean = jnp.mean(x, axis=-1, keepdims=True)
    var = jnp.mean((x - mean) ** 2, axis=-1, keepdims=True)
    return (x - mean) * lax.rsqrt(var + LN_EPS) * w + b


def _gnn_kernel(emb_ref, w1_ref, w2_ref, w3_ref, lnw_ref, lnb_ref,
                wout_ref, bout_ref, out_ref):
    BB, S, D = emb_ref.shape           # batch-elements in this block
    H = w1_ref.shape[1]
    V = wout_ref.shape[1]
    N = BB * S

    e = emb_ref[...]                                          # (BB, S, D) raw embeddings

    # --- embedding L2 normalization (VectorizedQuantumGeometricEmbedding) ---
    nsq = jnp.sum(e * e, axis=-1, keepdims=True)              # (BB, S, 1)
    en = e * lax.rsqrt(jnp.maximum(nsq, 1e-12))               # (BB, S, D)

    # --- VectorizedQuantumGeometricAttention (batched) ---
    n2 = jnp.sum(en * en, axis=-1, keepdims=True)             # (BB, S, 1)
    dots = jnp.einsum('bsd,btd->bst', en, en,
                      preferred_element_type=jnp.float32)     # (BB, S, S)
    n2b = jnp.broadcast_to(n2, (BB, S, S))
    sq = n2b + jnp.transpose(n2b, (0, 2, 1)) - 2.0 * dots
    dist = jnp.sqrt(jnp.maximum(sq, 1e-12))
    row = lax.broadcasted_iota(jnp.int32, (BB, S, S), 1)
    col = lax.broadcasted_iota(jnp.int32, (BB, S, S), 2)
    off_diag = row != col
    dist = jnp.where(off_diag, dist, 0.0)                     # dist * (1 - eye)
    scaled = dist * (-1.0 / TEMPERATURE)
    m = jnp.max(scaled, axis=-1, keepdims=True)
    p = jnp.exp(scaled - m)
    denom = jnp.sum(p, axis=-1, keepdims=True)
    attn = p * pl.reciprocal(denom, approx=True)              # softmax over dst axis

    # --- sparse graph as dense masked adjacency ---
    # edge (src, dst) kept iff attn[b, src, dst] > threshold and src != dst
    # TODO(synk): the torch fallback (all-self-loop graph when zero edges
    # survive thresholding) is not replicated; it never triggers at these sizes.
    A = jnp.where((attn > SPARSITY_THRESHOLD) & off_diag, attn, 0.0)   # (BB, S, S)
    At = jnp.transpose(A, (0, 2, 1))   # transpose hoisted: reused by all 3 layers

    def message_pass(x_flat, w):
        # out[b, dst] = sum_src A[b, src, dst] * 0.1 * (x @ w)[b, src]
        # projection runs on the whole (N, *) slab; aggregation is batched.
        h = jnp.dot(x_flat, w, preferred_element_type=jnp.float32)     # (N, Hout)
        h3 = h.reshape(BB, S, h.shape[-1])
        agg = jnp.einsum('bds,bsh->bdh', At, h3,
                         preferred_element_type=jnp.float32)           # (BB, S, Hout)
        return (EDGE_WEIGHT * agg).reshape(N, h.shape[-1])

    lnw = lnw_ref[...]                                        # (1, H)
    lnb = lnb_ref[...]                                        # (1, H)

    x = en.reshape(N, D)                                      # flatten batch*seq
    # GNN layer 0
    x = _layer_norm(message_pass(x, w1_ref[...]), lnw, lnb)
    # GNN layer 1 (residual)
    x = _layer_norm(x + message_pass(x, w2_ref[...]), lnw, lnb)
    # GNN layer 2 (residual)
    x = _layer_norm(x + message_pass(x, w3_ref[...]), lnw, lnb)
    # dropout == identity in eval mode

    logits = jnp.dot(x, wout_ref[...],
                     preferred_element_type=jnp.float32) + bout_ref[...]   # (N, V)
    out_ref[...] = logits.reshape(BB, S, V)


def quantum_flux_gnn_forward(tokens, params, *, embedding_dim, max_seq_len,
                             num_batch_blocks=1):
    B, S = tokens.shape
    D = embedding_dim
    H = params["w1"].shape[1]
    V = params["w_out"].shape[1]
    assert B % num_batch_blocks == 0
    BB = B // num_batch_blocks

    # --- plain-JAX glue: assemble (unnormalized) quantum-geometric embeddings
    # with a single concat (no repeated scatter-updates of the full slab). ---
    pos = jnp.arange(S, dtype=jnp.float32)                    # positions[:S]
    thetas = 2.0 * math.pi * (pos / max_seq_len)
    rs = 0.3 + 0.6 * (pos / max(1, max_seq_len - 1))
    spiral = jnp.stack([rs * jnp.cos(thetas), rs * jnp.sin(thetas)], axis=-1)  # (S, 2)
    spiral = jnp.broadcast_to(spiral[None], (B, S, 2))
    token_embs = params["token_embedding"][tokens][:, :, : D - 2]              # (B, S, D-2)
    emb = jnp.concatenate([spiral, token_embs], axis=-1)                       # (B, S, D)

    # Constant-weight operands are DMA'd once: the grid has a single step by
    # default (and constant index_maps are not re-fetched across steps).
    return pl.pallas_call(
        _gnn_kernel,
        out_shape=jax.ShapeDtypeStruct((B, S, V), jnp.float32),
        grid_spec=pltpu.PrefetchScalarGridSpec(
            num_scalar_prefetch=0,
            grid=(num_batch_blocks,),
            in_specs=[
                pl.BlockSpec((BB, S, D), lambda b: (b, 0, 0)),   # embeddings
                pl.BlockSpec((D, H), lambda b: (0, 0)),          # gnn layer 0 weight
                pl.BlockSpec((H, H), lambda b: (0, 0)),          # gnn layer 1 weight
                pl.BlockSpec((H, H), lambda b: (0, 0)),          # gnn layer 2 weight
                pl.BlockSpec((1, H), lambda b: (0, 0)),          # layer-norm gamma
                pl.BlockSpec((1, H), lambda b: (0, 0)),          # layer-norm beta
                pl.BlockSpec((H, V), lambda b: (0, 0)),          # output projection W
                pl.BlockSpec((1, V), lambda b: (0, 0)),          # output projection b
            ],
            out_specs=pl.BlockSpec((BB, S, V), lambda b: (b, 0, 0)),
        ),
        compiler_params=pltpu.CompilerParams(dimension_semantics=("parallel",)),
    )(emb, params["w1"], params["w2"], params["w3"],
      params["ln_w"], params["ln_b"], params["w_out"], params["b_out"])


def init_params(key, vocab_size, embedding_dim, hidden_dim):
    D, H, V = embedding_dim, hidden_dim, vocab_size
    ks = jax.random.split(key, 5)

    def xavier(k, fan_in, fan_out):
        bound = math.sqrt(6.0 / (fan_in + fan_out))
        return jax.random.uniform(k, (fan_in, fan_out), jnp.float32, -bound, bound)

    # golden-ratio token-embedding pattern (matches _init_golden_weights)
    phi = (1.0 + math.sqrt(5.0)) / 2.0
    i_idx = jnp.arange(V, dtype=jnp.float32)[:, None]
    j_idx = jnp.arange(D, dtype=jnp.float32)[None, :]
    token_embedding = jnp.cos(2.0 * math.pi * jnp.mod(i_idx * j_idx * phi, 1.0))

    return {
        "token_embedding": token_embedding,                       # (V, D)
        "w1": xavier(ks[0], D, H),                                # lin weights stored (in, out)
        "w2": xavier(ks[1], H, H),
        "w3": xavier(ks[2], H, H),
        "ln_w": jnp.ones((1, H), jnp.float32),                    # LayerNorm default init
        "ln_b": jnp.zeros((1, H), jnp.float32),
        "w_out": xavier(ks[3], H, V),
        "b_out": jax.random.uniform(ks[4], (1, V), jnp.float32,
                                    -1.0 / math.sqrt(H), 1.0 / math.sqrt(H)),
    }


if __name__ == "__main__":
    B, S = 2, 8                 # batch, sequence length
    D, H, V = 32, 64, 128       # embedding_dim, hidden_dim, vocab_size
    MAX_SEQ_LEN = 512           # module default

    key = jax.random.PRNGKey(0)
    k_tok, k_par = jax.random.split(key)
    tokens = jax.random.randint(k_tok, (B, S), 0, V, dtype=jnp.int32)
    params = init_params(k_par, V, D, H)

    logits = quantum_flux_gnn_forward(tokens, params,
                                      embedding_dim=D, max_seq_len=MAX_SEQ_LEN)
    logits = jax.block_until_ready(logits)
    assert logits.shape == (B, S, V) and logits.dtype == jnp.float32
    assert bool(jnp.all(jnp.isfinite(logits)))
    print("KERNEL_OK")
</pallas_src>

<mosaic_0001>
module attributes {stable_mosaic.version = 11 : i64} {
  func.func @_gnn_kernel(%arg0: i32, %arg1: memref<2x8x32xf32, #tpu.memory_space<vmem>>, %arg2: memref<32x64xf32, #tpu.memory_space<vmem>>, %arg3: memref<64x64xf32, #tpu.memory_space<vmem>>, %arg4: memref<64x64xf32, #tpu.memory_space<vmem>>, %arg5: memref<1x64xf32, #tpu.memory_space<vmem>>, %arg6: memref<1x64xf32, #tpu.memory_space<vmem>>, %arg7: memref<64x128xf32, #tpu.memory_space<vmem>>, %arg8: memref<1x128xf32, #tpu.memory_space<vmem>>, %arg9: memref<2x8x128xf32, #tpu.memory_space<vmem>>) attributes {dimension_semantics = [#tpu.dimension_semantics<parallel>], iteration_bounds = array<i64: 1>, scalar_prefetch = 0 : i64, scratch_operands = 0 : i64, tpu.core_type = #tpu.core_type<tc>, window_params = [{transform_indices = @transform_0, window_bounds = array<i64: 2, 8, 32>}, {pipeline_mode = #tpu.pipeline_mode<synchronous>, transform_indices = @transform_1, window_bounds = array<i64: 32, 64>}, {pipeline_mode = #tpu.pipeline_mode<synchronous>, transform_indices = @transform_2, window_bounds = array<i64: 64, 64>}, {pipeline_mode = #tpu.pipeline_mode<synchronous>, transform_indices = @transform_3, window_bounds = array<i64: 64, 64>}, {pipeline_mode = #tpu.pipeline_mode<synchronous>, transform_indices = @transform_4, window_bounds = array<i64: 1, 64>}, {pipeline_mode = #tpu.pipeline_mode<synchronous>, transform_indices = @transform_5, window_bounds = array<i64: 1, 64>}, {pipeline_mode = #tpu.pipeline_mode<synchronous>, transform_indices = @transform_6, window_bounds = array<i64: 64, 128>}, {pipeline_mode = #tpu.pipeline_mode<synchronous>, transform_indices = @transform_7, window_bounds = array<i64: 1, 128>}, {transform_indices = @transform_8, window_bounds = array<i64: 2, 8, 128>}]} {
    %c0 = arith.constant 0 : index
    %c0_0 = arith.constant 0 : index
    %c0_1 = arith.constant 0 : index
    %0 = vector.load %arg1[%c0, %c0_0, %c0_1] : memref<2x8x32xf32, #tpu.memory_space<vmem>>, vector<2x8x32xf32>
    %1 = arith.mulf %0, %0 : vector<2x8x32xf32>
    %cst = arith.constant dense<0.000000e+00> : vector<2x8xf32>
    %2 = vector.multi_reduction <add>, %1, %cst [2] : vector<2x8x32xf32> to vector<2x8xf32>
    %3 = vector.shape_cast %2 : vector<2x8xf32> to vector<2x8x1xf32>
    %cst_2 = arith.constant 9.99999996E-13 : f32
    %4 = vector.broadcast %cst_2 : f32 to vector<2x8x1xf32>
    %5 = arith.maximumf %3, %4 : vector<2x8x1xf32>
    %6 = math.rsqrt %5 : vector<2x8x1xf32>
    %7 = vector.broadcast %6 : vector<2x8x1xf32> to vector<2x8x32xf32>
    %8 = arith.mulf %0, %7 : vector<2x8x32xf32>
    %9 = arith.mulf %8, %8 : vector<2x8x32xf32>
    %cst_3 = arith.constant dense<0.000000e+00> : vector<2x8xf32>
    %10 = vector.multi_reduction <add>, %9, %cst_3 [2] : vector<2x8x32xf32> to vector<2x8xf32>
    %11 = vector.shape_cast %10 : vector<2x8xf32> to vector<2x8x1xf32>
    "tpu.trace_start"() <{level = 10 : i32, message = "bsd,btd->bst"}> : () -> ()
    %cst_4 = arith.constant dense<0.000000e+00> : vector<2x8x8xf32>
    %12 = tpu.matmul %8, %8, %cst_4 {dimension_numbers = #tpu.dot_dimension_numbers<[2], [2], [1], [1], [0, 0, 0, 1, 1, 1], [0], [0]>} : vector<2x8x32xf32>, vector<2x8x32xf32>, vector<2x8x8xf32> -> vector<2x8x8xf32>
    "tpu.trace_stop"() : () -> ()
    %13 = vector.shape_cast %11 : vector<2x8x1xf32> to vector<2x8x1xf32>
    %14 = vector.broadcast %13 : vector<2x8x1xf32> to vector<2x8x8xf32>
    %15 = tpu.transpose %14, [0, 2, 1] : vector<2x8x8xf32> -> vector<2x8x8xf32>
    %16 = arith.addf %14, %15 : vector<2x8x8xf32>
    %cst_5 = arith.constant 2.000000e+00 : f32
    %17 = vector.broadcast %cst_5 : f32 to vector<2x8x8xf32>
    %18 = arith.mulf %17, %12 : vector<2x8x8xf32>
    %19 = arith.subf %16, %18 : vector<2x8x8xf32>
    %cst_6 = arith.constant 9.99999996E-13 : f32
    %20 = vector.broadcast %cst_6 : f32 to vector<2x8x8xf32>
    %21 = arith.maximumf %19, %20 : vector<2x8x8xf32>
    %22 = math.sqrt %21 : vector<2x8x8xf32>
    %23 = tpu.iota {dimensions = array<i32: 1>} : vector<2x8x8xi32>
    %24 = tpu.iota {dimensions = array<i32: 2>} : vector<2x8x8xi32>
    %25 = arith.cmpi ne, %23, %24 : vector<2x8x8xi32>
    %cst_7 = arith.constant 0.000000e+00 : f32
    %26 = vector.broadcast %cst_7 : f32 to vector<2x8x8xf32>
    %27 = arith.select %25, %22, %26 : vector<2x8x8xi1>, vector<2x8x8xf32>
    %cst_8 = arith.constant -2.000000e+00 : f32
    %28 = vector.broadcast %cst_8 : f32 to vector<2x8x8xf32>
    %29 = arith.mulf %27, %28 : vector<2x8x8xf32>
    %cst_9 = arith.constant dense<0xFF800000> : vector<2x8xf32>
    %30 = vector.multi_reduction <maximumf>, %29, %cst_9 [2] : vector<2x8x8xf32> to vector<2x8xf32>
    %31 = vector.shape_cast %30 : vector<2x8xf32> to vector<2x8x1xf32>
    %32 = vector.broadcast %31 : vector<2x8x1xf32> to vector<2x8x8xf32>
    %33 = arith.subf %29, %32 : vector<2x8x8xf32>
    %34 = math.exp %33 : vector<2x8x8xf32>
    %cst_10 = arith.constant dense<0.000000e+00> : vector<2x8xf32>
    %35 = vector.multi_reduction <add>, %34, %cst_10 [2] : vector<2x8x8xf32> to vector<2x8xf32>
    %36 = vector.shape_cast %35 : vector<2x8xf32> to vector<2x8x1xf32>
    %37 = tpu.reciprocal %36 {approx = true} : vector<2x8x1xf32> -> vector<2x8x1xf32>
    %38 = vector.broadcast %37 : vector<2x8x1xf32> to vector<2x8x8xf32>
    %39 = arith.mulf %34, %38 : vector<2x8x8xf32>
    %cst_11 = arith.constant 0.00999999977 : f32
    %40 = vector.broadcast %cst_11 : f32 to vector<2x8x8xf32>
    %41 = arith.cmpf ogt, %39, %40 : vector<2x8x8xf32>
    %42 = arith.andi %41, %25 : vector<2x8x8xi1>
    %cst_12 = arith.constant 0.000000e+00 : f32
    %43 = vector.broadcast %cst_12 : f32 to vector<2x8x8xf32>
    %44 = arith.select %42, %39, %43 : vector<2x8x8xi1>, vector<2x8x8xf32>
    %45 = tpu.transpose %44, [0, 2, 1] : vector<2x8x8xf32> -> vector<2x8x8xf32>
    %c0_13 = arith.constant 0 : index
    %c0_14 = arith.constant 0 : index
    %46 = vector.load %arg5[%c0_13, %c0_14] : memref<1x64xf32, #tpu.memory_space<vmem>>, vector<1x64xf32>
    %c0_15 = arith.constant 0 : index
    %c0_16 = arith.constant 0 : index
    %47 = vector.load %arg6[%c0_15, %c0_16] : memref<1x64xf32, #tpu.memory_space<vmem>>, vector<1x64xf32>
    %48 = vector.shape_cast %8 : vector<2x8x32xf32> to vector<16x32xf32>
    %c0_17 = arith.constant 0 : index
    %c0_18 = arith.constant 0 : index
    %49 = vector.load %arg2[%c0_17, %c0_18] : memref<32x64xf32, #tpu.memory_space<vmem>>, vector<32x64xf32>
    %cst_19 = arith.constant dense<0.000000e+00> : vector<16x64xf32>
    %50 = tpu.matmul %48, %49, %cst_19 {dimension_numbers = #tpu.dot_dimension_numbers<[1], [0], [0], [1], [0, 0, 1, 1], [], []>} : vector<16x32xf32>, vector<32x64xf32>, vector<16x64xf32> -> vector<16x64xf32>
    %51 = vector.shape_cast %50 : vector<16x64xf32> to vector<2x8x64xf32>
    "tpu.trace_start"() <{level = 10 : i32, message = "bds,bsh->bdh"}> : () -> ()
    %cst_20 = arith.constant dense<0.000000e+00> : vector<2x8x64xf32>
    %52 = tpu.matmul %45, %51, %cst_20 {dimension_numbers = #tpu.dot_dimension_numbers<[2], [1], [1], [2], [0, 0, 0, 1, 1, 2], [0], [0]>} : vector<2x8x8xf32>, vector<2x8x64xf32>, vector<2x8x64xf32> -> vector<2x8x64xf32>
    "tpu.trace_stop"() : () -> ()
    %cst_21 = arith.constant 1.000000e-01 : f32
    %53 = vector.broadcast %cst_21 : f32 to vector<2x8x64xf32>
    %54 = arith.mulf %53, %52 : vector<2x8x64xf32>
    %55 = vector.shape_cast %54 : vector<2x8x64xf32> to vector<16x64xf32>
    %cst_22 = arith.constant dense<0.000000e+00> : vector<16xf32>
    %56 = vector.multi_reduction <add>, %55, %cst_22 [1] : vector<16x64xf32> to vector<16xf32>
    %57 = vector.shape_cast %56 : vector<16xf32> to vector<16x1xf32>
    %cst_23 = arith.constant 6.400000e+01 : f32
    %58 = vector.broadcast %cst_23 : f32 to vector<16x1xf32>
    %59 = arith.divf %57, %58 : vector<16x1xf32>
    %60 = vector.broadcast %59 : vector<16x1xf32> to vector<16x64xf32>
    %61 = arith.subf %55, %60 : vector<16x64xf32>
    %62 = arith.mulf %61, %61 : vector<16x64xf32>
    %cst_24 = arith.constant dense<0.000000e+00> : vector<16xf32>
    %63 = vector.multi_reduction <add>, %62, %cst_24 [1] : vector<16x64xf32> to vector<16xf32>
    %64 = vector.shape_cast %63 : vector<16xf32> to vector<16x1xf32>
    %cst_25 = arith.constant 6.400000e+01 : f32
    %65 = vector.broadcast %cst_25 : f32 to vector<16x1xf32>
    %66 = arith.divf %64, %65 : vector<16x1xf32>
    %67 = vector.broadcast %59 : vector<16x1xf32> to vector<16x64xf32>
    %68 = arith.subf %55, %67 : vector<16x64xf32>
    %cst_26 = arith.constant 9.99999974E-6 : f32
    %69 = vector.broadcast %cst_26 : f32 to vector<16x1xf32>
    %70 = arith.addf %66, %69 : vector<16x1xf32>
    %71 = math.rsqrt %70 : vector<16x1xf32>
    %72 = vector.broadcast %71 : vector<16x1xf32> to vector<16x64xf32>
    %73 = arith.mulf %68, %72 : vector<16x64xf32>
    %74 = vector.broadcast %46 : vector<1x64xf32> to vector<16x64xf32>
    %75 = arith.mulf %73, %74 : vector<16x64xf32>
    %76 = vector.broadcast %47 : vector<1x64xf32> to vector<16x64xf32>
    %77 = arith.addf %75, %76 : vector<16x64xf32>
    %c0_27 = arith.constant 0 : index
    %c0_28 = arith.constant 0 : index
    %78 = vector.load %arg3[%c0_27, %c0_28] : memref<64x64xf32, #tpu.memory_space<vmem>>, vector<64x64xf32>
    %cst_29 = arith.constant dense<0.000000e+00> : vector<16x64xf32>
    %79 = tpu.matmul %77, %78, %cst_29 {dimension_numbers = #tpu.dot_dimension_numbers<[1], [0], [0], [1], [0, 0, 1, 1], [], []>} : vector<16x64xf32>, vector<64x64xf32>, vector<16x64xf32> -> vector<16x64xf32>
    %80 = vector.shape_cast %79 : vector<16x64xf32> to vector<2x8x64xf32>
    "tpu.trace_start"() <{level = 10 : i32, message = "bds,bsh->bdh"}> : () -> ()
    %cst_30 = arith.constant dense<0.000000e+00> : vector<2x8x64xf32>
    %81 = tpu.matmul %45, %80, %cst_30 {dimension_numbers = #tpu.dot_dimension_numbers<[2], [1], [1], [2], [0, 0, 0, 1, 1, 2], [0], [0]>} : vector<2x8x8xf32>, vector<2x8x64xf32>, vector<2x8x64xf32> -> vector<2x8x64xf32>
    "tpu.trace_stop"() : () -> ()
    %cst_31 = arith.constant 1.000000e-01 : f32
    %82 = vector.broadcast %cst_31 : f32 to vector<2x8x64xf32>
    %83 = arith.mulf %82, %81 : vector<2x8x64xf32>
    %84 = vector.shape_cast %83 : vector<2x8x64xf32> to vector<16x64xf32>
    %85 = arith.addf %77, %84 : vector<16x64xf32>
    %cst_32 = arith.constant dense<0.000000e+00> : vector<16xf32>
    %86 = vector.multi_reduction <add>, %85, %cst_32 [1] : vector<16x64xf32> to vector<16xf32>
    %87 = vector.shape_cast %86 : vector<16xf32> to vector<16x1xf32>
    %cst_33 = arith.constant 6.400000e+01 : f32
    %88 = vector.broadcast %cst_33 : f32 to vector<16x1xf32>
    %89 = arith.divf %87, %88 : vector<16x1xf32>
    %90 = vector.broadcast %89 : vector<16x1xf32> to vector<16x64xf32>
    %91 = arith.subf %85, %90 : vector<16x64xf32>
    %92 = arith.mulf %91, %91 : vector<16x64xf32>
    %cst_34 = arith.constant dense<0.000000e+00> : vector<16xf32>
    %93 = vector.multi_reduction <add>, %92, %cst_34 [1] : vector<16x64xf32> to vector<16xf32>
    %94 = vector.shape_cast %93 : vector<16xf32> to vector<16x1xf32>
    %cst_35 = arith.constant 6.400000e+01 : f32
    %95 = vector.broadcast %cst_35 : f32 to vector<16x1xf32>
    %96 = arith.divf %94, %95 : vector<16x1xf32>
    %97 = vector.broadcast %89 : vector<16x1xf32> to vector<16x64xf32>
    %98 = arith.subf %85, %97 : vector<16x64xf32>
    %cst_36 = arith.constant 9.99999974E-6 : f32
    %99 = vector.broadcast %cst_36 : f32 to vector<16x1xf32>
    %100 = arith.addf %96, %99 : vector<16x1xf32>
    %101 = math.rsqrt %100 : vector<16x1xf32>
    %102 = vector.broadcast %101 : vector<16x1xf32> to vector<16x64xf32>
    %103 = arith.mulf %98, %102 : vector<16x64xf32>
    %104 = vector.broadcast %46 : vector<1x64xf32> to vector<16x64xf32>
    %105 = arith.mulf %103, %104 : vector<16x64xf32>
    %106 = vector.broadcast %47 : vector<1x64xf32> to vector<16x64xf32>
    %107 = arith.addf %105, %106 : vector<16x64xf32>
    %c0_37 = arith.constant 0 : index
    %c0_38 = arith.constant 0 : index
    %108 = vector.load %arg4[%c0_37, %c0_38] : memref<64x64xf32, #tpu.memory_space<vmem>>, vector<64x64xf32>
    %cst_39 = arith.constant dense<0.000000e+00> : vector<16x64xf32>
    %109 = tpu.matmul %107, %108, %cst_39 {dimension_numbers = #tpu.dot_dimension_numbers<[1], [0], [0], [1], [0, 0, 1, 1], [], []>} : vector<16x64xf32>, vector<64x64xf32>, vector<16x64xf32> -> vector<16x64xf32>
    %110 = vector.shape_cast %109 : vector<16x64xf32> to vector<2x8x64xf32>
    "tpu.trace_start"() <{level = 10 : i32, message = "bds,bsh->bdh"}> : () -> ()
    %cst_40 = arith.constant dense<0.000000e+00> : vector<2x8x64xf32>
    %111 = tpu.matmul %45, %110, %cst_40 {dimension_numbers = #tpu.dot_dimension_numbers<[2], [1], [1], [2], [0, 0, 0, 1, 1, 2], [0], [0]>} : vector<2x8x8xf32>, vector<2x8x64xf32>, vector<2x8x64xf32> -> vector<2x8x64xf32>
    "tpu.trace_stop"() : () -> ()
    %cst_41 = arith.constant 1.000000e-01 : f32
    %112 = vector.broadcast %cst_41 : f32 to vector<2x8x64xf32>
    %113 = arith.mulf %112, %111 : vector<2x8x64xf32>
    %114 = vector.shape_cast %113 : vector<2x8x64xf32> to vector<16x64xf32>
    %115 = arith.addf %107, %114 : vector<16x64xf32>
    %cst_42 = arith.constant dense<0.000000e+00> : vector<16xf32>
    %116 = vector.multi_reduction <add>, %115, %cst_42 [1] : vector<16x64xf32> to vector<16xf32>
    %117 = vector.shape_cast %116 : vector<16xf32> to vector<16x1xf32>
    %cst_43 = arith.constant 6.400000e+01 : f32
    %118 = vector.broadcast %cst_43 : f32 to vector<16x1xf32>
    %119 = arith.divf %117, %118 : vector<16x1xf32>
    %120 = vector.broadcast %119 : vector<16x1xf32> to vector<16x64xf32>
    %121 = arith.subf %115, %120 : vector<16x64xf32>
    %122 = arith.mulf %121, %121 : vector<16x64xf32>
    %cst_44 = arith.constant dense<0.000000e+00> : vector<16xf32>
    %123 = vector.multi_reduction <add>, %122, %cst_44 [1] : vector<16x64xf32> to vector<16xf32>
    %124 = vector.shape_cast %123 : vector<16xf32> to vector<16x1xf32>
    %cst_45 = arith.constant 6.400000e+01 : f32
    %125 = vector.broadcast %cst_45 : f32 to vector<16x1xf32>
    %126 = arith.divf %124, %125 : vector<16x1xf32>
    %127 = vector.broadcast %119 : vector<16x1xf32> to vector<16x64xf32>
    %128 = arith.subf %115, %127 : vector<16x64xf32>
    %cst_46 = arith.constant 9.99999974E-6 : f32
    %129 = vector.broadcast %cst_46 : f32 to vector<16x1xf32>
    %130 = arith.addf %126, %129 : vector<16x1xf32>
    %131 = math.rsqrt %130 : vector<16x1xf32>
    %132 = vector.broadcast %131 : vector<16x1xf32> to vector<16x64xf32>
    %133 = arith.mulf %128, %132 : vector<16x64xf32>
    %134 = vector.broadcast %46 : vector<1x64xf32> to vector<16x64xf32>
    %135 = arith.mulf %133, %134 : vector<16x64xf32>
    %136 = vector.broadcast %47 : vector<1x64xf32> to vector<16x64xf32>
    %137 = arith.addf %135, %136 : vector<16x64xf32>
    %c0_47 = arith.constant 0 : index
    %c0_48 = arith.constant 0 : index
    %138 = vector.load %arg7[%c0_47, %c0_48] : memref<64x128xf32, #tpu.memory_space<vmem>>, vector<64x128xf32>
    %cst_49 = arith.constant dense<0.000000e+00> : vector<16x128xf32>
    %139 = tpu.matmul %137, %138, %cst_49 {dimension_numbers = #tpu.dot_dimension_numbers<[1], [0], [0], [1], [0, 0, 1, 1], [], []>} : vector<16x64xf32>, vector<64x128xf32>, vector<16x128xf32> -> vector<16x128xf32>
    %c0_50 = arith.constant 0 : index
    %c0_51 = arith.constant 0 : index
    %140 = vector.load %arg8[%c0_50, %c0_51] : memref<1x128xf32, #tpu.memory_space<vmem>>, vector<1x128xf32>
    %141 = vector.broadcast %140 : vector<1x128xf32> to vector<16x128xf32>
    %142 = arith.addf %139, %141 : vector<16x128xf32>
    %143 = vector.shape_cast %142 : vector<16x128xf32> to vector<2x8x128xf32>
    %c0_52 = arith.constant 0 : index
    %c0_53 = arith.constant 0 : index
    %c0_54 = arith.constant 0 : index
    %144 = vector.load %arg9[%c0_52, %c0_53, %c0_54] : memref<2x8x128xf32, #tpu.memory_space<vmem>>, vector<2x8x128xf32>
    tpu.vector_store %arg9[%c0_52, %c0_53, %c0_54], %143 {strides = array<i32>} : memref<2x8x128xf32, #tpu.memory_space<vmem>>, vector<2x8x128xf32>,
    return
  }
  func.func @transform_0(%arg0: i32) -> (i32, i32, i32) {
    %c0_i32 = arith.constant 0 : i32
    %c0_i32_0 = arith.constant 0 : i32
    %c0_i32_1 = arith.constant 0 : i32
    return %arg0, %c0_i32, %c0_i32_0 : i32, i32, i32
  }
  func.func @transform_1(%arg0: i32) -> (i32, i32) {
    %c0_i32 = arith.constant 0 : i32
    %c0_i32_0 = arith.constant 0 : i32
    %c0_i32_1 = arith.constant 0 : i32
    return %c0_i32, %c0_i32_0 : i32, i32
  }
  func.func @transform_2(%arg0: i32) -> (i32, i32) {
    %c0_i32 = arith.constant 0 : i32
    %c0_i32_0 = arith.constant 0 : i32
    %c0_i32_1 = arith.constant 0 : i32
    return %c0_i32, %c0_i32_0 : i32, i32
  }
  func.func @transform_3(%arg0: i32) -> (i32, i32) {
    %c0_i32 = arith.constant 0 : i32
    %c0_i32_0 = arith.constant 0 : i32
    %c0_i32_1 = arith.constant 0 : i32
    return %c0_i32, %c0_i32_0 : i32, i32
  }
  func.func @transform_4(%arg0: i32) -> (i32, i32) {
    %c0_i32 = arith.constant 0 : i32
    %c0_i32_0 = arith.constant 0 : i32
    %c0_i32_1 = arith.constant 0 : i32
    return %c0_i32, %c0_i32_0 : i32, i32
  }
  func.func @transform_5(%arg0: i32) -> (i32, i32) {
    %c0_i32 = arith.constant 0 : i32
    %c0_i32_0 = arith.constant 0 : i32
    %c0_i32_1 = arith.constant 0 : i32
    return %c0_i32, %c0_i32_0 : i32, i32
  }
  func.func @transform_6(%arg0: i32) -> (i32, i32) {
    %c0_i32 = arith.constant 0 : i32
    %c0_i32_0 = arith.constant 0 : i32
    %c0_i32_1 = arith.constant 0 : i32
    return %c0_i32, %c0_i32_0 : i32, i32
  }
  func.func @transform_7(%arg0: i32) -> (i32, i32) {
    %c0_i32 = arith.constant 0 : i32
    %c0_i32_0 = arith.constant 0 : i32
    %c0_i32_1 = arith.constant 0 : i32
    return %c0_i32, %c0_i32_0 : i32, i32
  }
  func.func @transform_8(%arg0: i32) -> (i32, i32, i32) {
    %c0_i32 = arith.constant 0 : i32
    %c0_i32_0 = arith.constant 0 : i32
    %c0_i32_1 = arith.constant 0 : i32
    return %arg0, %c0_i32, %c0_i32_0 : i32, i32, i32
  }
}

</mosaic_0001>

<bundles_post_ra>
// kernel: tpu_custom_call.1
= control target key start
LH: loop header
LB: loop body
LE: loop exit
PB: predicated region body
PF: predicated region fallthrough
CT: control target
= control target key end

     0   :  { %13 = vsyncpa [#allocation3], 0  ;;  %s2051_s0 = inlined_call_operand.hbm [shape: f32[2,8,32], index: 0, kind: input, shape index: {}]   ;;  %s2052_s1 = inlined_call_operand.hbm [shape: f32[32,64], index: 1, kind: input, shape index: {}]   ;;  %s2053_s2 = inlined_call_operand.hbm [shape: f32[64,64], index: 2, kind: input, shape index: {}]   ;;  %s2054_s3 = inlined_call_operand.hbm [shape: f32[64,64], index: 3, kind: input, shape index: {}]   ;;  %s2055_s4 = inlined_call_operand.vmem [shape: f32[1,64], index: 4, kind: input, shape index: {}]   ;;  %s2056_s5 = inlined_call_operand.vmem [shape: f32[1,64], index: 5, kind: input, shape index: {}]   ;;  %s2057_s6 = inlined_call_operand.hbm [shape: f32[64,128], index: 6, kind: input, shape index: {}]   ;;  %s2058_s7 = inlined_call_operand.vmem [shape: f32[1,128], index: 7, kind: input, shape index: {}]   ;;  %s2059_s8 = inlined_call_operand.hbm [shape: f32[2,8,128], index: 8, kind: output, shape index: {}]  }
   0x1   :  { %14 = vsyncpa [#allocation6], 0 }
   0x2   :  { %15 = vsyncpa [#allocation9], 0 }
   0x3   :  { %16 = vsyncpa [#allocation4], 0  ;;  %s1788_s27 = smov [#allocation5]   ;;  %s1789_s29 = smov [#allocation8]  }
   0x4   :  { %s34_s28 = sshll.u32 %s1788_s27, 4  ;;  %s58_s30 = sshll.u32 %s1789_s29, 4  ;;  %s35_s28 = int_to_ptr.vmem [resolvable:$true] %s34_s28  ;;  %s1843_s30 = int_to_ptr.vmem [resolvable:$true] %s58_s30 }
   0x5   :  { %s1648_s11 = scalar_lea.hbm %s2052_s1, 512 }
   0x6   :  { %p1649_p0 = scmp.ne.s32.totalorder %s2052_s1, %s1648_s11  ;;  %p1652_p1 = scmp.lt.u32.totalorder %s1648_s11, %s2052_s1 }
   0x8   :  { %p1654_p2 = pnand %p1652_p1, %p1649_p0 }
   0xa   :  { %1657 = shalt.err (!%p1654_p2)
}
   0xb   :  { %s1658_s16 = scalar_lea.vmem %s35_s28, 512  ;;  %p1663_p4 = scmp.lt.s32.totalorder %s35_s28, %s35_s28 }
   0xc   :  { %p1659_p3 = scmp.ne.s32.totalorder %s35_s28, %s1658_s16  ;;  %p1664_p5 = scmp.lt.s32.totalorder %s1658_s16, %s1658_s16 }
   0xe   :  { %p1665_p6 = por %p1664_p5, %p1663_p4 }
  0x10   :  { %p1666_p7 = pnand %p1665_p6, %p1659_p3 }
  0x12   :  { %1669 = shalt.err (!%p1666_p7)
}
  0x13   :  { %s1790_s17 = smov 128   ;;  %s1791_s18 = smov 8  }
  0x14   :  { %40 = dma.hbm_to_vmem [thread:$0]  %s2052_s1, 512, %s35_s28, [#allocation6], %s1790_s17, %s1790_s17, %s1791_s18  }
  0x15   :  { %s1670_s23 = scalar_lea.hbm %s2054_s3, 1024 }
  0x16   :  { %p1671_p8 = scmp.ne.s32.totalorder %s2054_s3, %s1670_s23  ;;  %p1674_p9 = scmp.lt.u32.totalorder %s1670_s23, %s2054_s3 }
  0x18   :  { %p1676_p10 = pnand %p1674_p9, %p1671_p8 }
  0x1a   :  { %1679 = shalt.err (!%p1676_p10)
}
  0x1b   :  { %s1680_s29 = scalar_lea.vmem %s1843_s30, 1024  ;;  %p1685_p12 = scmp.lt.s32.totalorder %s1843_s30, %s1843_s30 }
  0x1c   :  { %p1681_p11 = scmp.ne.s32.totalorder %s1843_s30, %s1680_s29  ;;  %p1686_p13 = scmp.lt.s32.totalorder %s1680_s29, %s1680_s29 }
  0x1e   :  { %p1687_p0 = por %p1686_p13, %p1685_p12 }
  0x20   :  { %p1688_p1 = pnand %p1687_p0, %p1681_p11 }
  0x22   :  { %1691 = shalt.err (!%p1688_p1)
}
  0x23   :  { %64 = dma.hbm_to_vmem [thread:$0]  %s2054_s3, 1024, %s1843_s30, [#allocation9], %s1790_s17, %s1790_s17, %s1791_s18  }
  0x24   :  { %s1792_s9 = smov [#allocation2]   ;;  %s1793_s11 = smov [#allocation7]  }
  0x25   :  { %s22_s10 = sshll.u32 %s1792_s9, 4  ;;  %s46_s12 = sshll.u32 %s1793_s11, 4  ;;  %s23_s10 = int_to_ptr.vmem [resolvable:$true] %s22_s10  ;;  %s1880_s12 = int_to_ptr.vmem [resolvable:$true] %s46_s12 }
  0x26   :  { %s1692_s15 = scalar_lea.hbm %s2051_s0, 256 }
  0x27   :  { %p1693_p2 = scmp.ne.s32.totalorder %s2051_s0, %s1692_s15  ;;  %p1696_p3 = scmp.lt.u32.totalorder %s1692_s15, %s2051_s0 }
  0x29   :  { %p1698_p4 = pnand %p1696_p3, %p1693_p2 }
  0x2b   :  { %1701 = shalt.err (!%p1698_p4)
}
  0x2c   :  { %s1702_s3 = scalar_lea.vmem %s23_s10, 256  ;;  %p1707_p6 = scmp.lt.s32.totalorder %s23_s10, %s23_s10 }
  0x2d   :  { %p1703_p5 = scmp.ne.s32.totalorder %s23_s10, %s1702_s3  ;;  %p1708_p7 = scmp.lt.s32.totalorder %s1702_s3, %s1702_s3 }
  0x2f   :  { %p1709_p8 = por %p1708_p7, %p1707_p6 }
  0x31   :  { %p1710_p9 = pnand %p1709_p8, %p1703_p5 }
  0x33   :  { %1713 = shalt.err (!%p1710_p9)
}
  0x34   :  { %28 = dma.hbm_to_vmem [thread:$0]  %s2051_s0, 256, %s23_s10, [#allocation3], %s1790_s17, %s1790_s17, %s1791_s18  }
  0x35   :  { %s1714_s25 = scalar_lea.hbm %s2053_s2, 1024 }
  0x36   :  { %p1715_p10 = scmp.ne.s32.totalorder %s2053_s2, %s1714_s25  ;;  %p1718_p11 = scmp.lt.u32.totalorder %s1714_s25, %s2053_s2 }
  0x38   :  { %p1720_p12 = pnand %p1718_p11, %p1715_p10 }
  0x3a   :  { %1723 = shalt.err (!%p1720_p12)
}
  0x3b   :  { %s1724_s28 = scalar_lea.vmem %s1880_s12, 1024  ;;  %p1729_p0 = scmp.lt.s32.totalorder %s1880_s12, %s1880_s12 }
  0x3c   :  { %p1725_p13 = scmp.ne.s32.totalorder %s1880_s12, %s1724_s28  ;;  %p1730_p1 = scmp.lt.s32.totalorder %s1724_s28, %s1724_s28 }
  0x3e   :  { %p1731_p2 = por %p1730_p1, %p1729_p0 }
  0x40   :  { %p1732_p3 = pnand %p1731_p2, %p1725_p13 }
  0x42   :  { %1735 = shalt.err (!%p1732_p3)
}
  0x43   :  { %52 = dma.hbm_to_vmem [thread:$0]  %s2053_s2, 1024, %s1880_s12, [#allocation6], %s1790_s17, %s1790_s17, %s1791_s18  }
  0x44   :  { %s1794_s10 = smov [#allocation10]   ;;  %s1736_s15 = scalar_lea.hbm %s2057_s6, 1024 }
  0x45   :  { %s74_s11 = sshll.u32 %s1794_s10, 4  ;;  %p1737_p4 = scmp.ne.s32.totalorder %s2057_s6, %s1736_s15  ;;  %s75_s11 = int_to_ptr.vmem [resolvable:$true] %s74_s11 }
  0x46   :  { %p1740_p5 = scmp.lt.u32.totalorder %s1736_s15, %s2057_s6 }
  0x48   :  { %p1742_p6 = pnand %p1740_p5, %p1737_p4 }
  0x4a   :  { %1745 = shalt.err (!%p1742_p6)
}
  0x4b   :  { %s1746_s3 = scalar_lea.vmem %s75_s11, 1024  ;;  %p1751_p8 = scmp.lt.s32.totalorder %s75_s11, %s75_s11 }
  0x4c   :  { %p1747_p7 = scmp.ne.s32.totalorder %s75_s11, %s1746_s3  ;;  %p1752_p9 = scmp.lt.s32.totalorder %s1746_s3, %s1746_s3 }
  0x4e   :  { %p1753_p10 = por %p1752_p9, %p1751_p8 }
  0x50   :  { %p1754_p11 = pnand %p1753_p10, %p1747_p7 }
  0x52   :  { %1757 = shalt.err (!%p1754_p11)
}
  0x53   :  { %80 = dma.hbm_to_vmem [thread:$0]  %s2057_s6, 1024, %s75_s11, [#allocation9], %s1790_s17, %s1790_s17, %s1791_s18  }
  0x54   :  { %1780 = dma.done.wait [#allocation3], 256  }
  0x55   :  { %1781 = vsyncadd [#allocation3], 4294967040 }
  0x56   :  { %1782 = dma.done.wait [#allocation6], 1536  }
  0x57   :  { %1783 = vsyncadd [#allocation6], 4294965760 }
  0x58   :  { %1784 = dma.done.wait [#allocation9], 2048  }
  0x59   :  { %1785 = vsyncadd [#allocation9], 4294965248  ;;  %v98_v0 = vld [vmem:[#allocation2] sm:$0xff]  ;;  %vm102_vm0 = vcmask 261120   ;;  %v99_v1 = vld [vmem:[#allocation2 + $0x8] sm:$0xff]  ;;  %v1795_v6 = vmov 0.0   ;;  %v355_v43 = vlaneseq }
  0x5a   :  { %v100_v2 = vmul.f32 %v98_v0, %v98_v0  ;;  %v101_v3 = vmul.f32 %v99_v1, %v99_v1  ;;  %1446 = vmatprep.subr.mxu0 %v1795_v6  ;;  %1451 = vmatprep.subr.mxu1 %v1795_v6  ;;  %vm1796_vm1 = vmmov 0   ;;  %v459_v13 = vld [vmem:[#allocation5] sm:$0xff]  ;;  %v460_v14 = vld [vmem:[#allocation5 + $0x8] sm:$0xff]  ;;  %v461_v20 = vld [vmem:[#allocation5 + $0x10] sm:$0xff]  ;;  %vm364_vm5 = vcmask 64512   ;;  %s1797_s24 = smov [#allocation11]  }
  0x5b   :  { %1448 = vmatprep.mubr.msk.f32.mxu0 %vm1796_vm1, %v1795_v6  ;;  %1453 = vmatprep.mubr.msk.f32.mxu1 %vm1796_vm1, %v1795_v6  ;;  %v1554_v17 = vpack.c.bf16 %v460_v14, %v459_v13  ;;  %v462_v21 = vld [vmem:[#allocation5 + $0x18] sm:$0xff]  ;;  %v356_v44 = vshrl.u32 %v355_v43, 7  ;;  %v358_v45 = vand.u32 127, %v355_v43  ;;  %vm686_vm12 = vcmask 523264   ;;  %v734_v43 = vld [vmem:[#allocation7 + $0x20] sm:$0xff]  ;;  %s1359_s25 = sshll.u32 %s1797_s24, 4  ;;  %s1360_s25 = int_to_ptr.vmem [resolvable:$true] %s1359_s25 }
  0x5c   :  { %v103_v4 = vsel %vm102_vm0, %v100_v2, 0.0  ;;  %v106_v5 = vsel %vm102_vm0, %v101_v3, 0.0  ;;  %v1558_v23 = vpack.c.bf16 %v462_v21, %v461_v20  ;;  %s1758_s26 = scalar_lea.vmem %s1360_s25, 256  ;;  %p1763_p13 = scmp.lt.s32.totalorder %s1360_s25, %s1360_s25 }
  0x5d   :  { %104 = vadd.xlane.f32.xlu0 %v103_v4  ;;  %vm359_vm3 = vcmp.ne.s32.totalorder %v356_v44, %v358_v45  ;;  %v735_v44 = vld [vmem:[#allocation7 + $0x28] sm:$0xff]  ;;  %p1759_p12 = scmp.ne.s32.totalorder %s1360_s25, %s1758_s26  ;;  %p1764_p0 = scmp.lt.s32.totalorder %s1758_s26, %s1758_s26 }
  0x5e   :  { %v1570_v45 = vpack.c.bf16 %v735_v44, %v734_v43 }
  0x5f   :  { %p1765_p1 = por %p1764_p0, %p1763_p13 }
  0x61   :  { %107 = vadd.xlane.f32.xlu0 %v106_v5  ;;  %p1766_p2 = pnand %p1765_p1, %p1759_p12 }
  0xea   :  { %v105_v7 = vpop.xlane.xlu0 %104 }
  0xeb   :  { %v109_v8 = vmax.f32 %v105_v7, 1e-12 }
  0xed   :  { %1620 = vrsqrt.f32 %v109_v8 }
  0xee   :  { %v108_v9 = vpop.xlane.xlu0 %107 }
  0xef   :  { %v110_v10 = vmax.f32 %v108_v9, 1e-12 }
  0xf1   :  { %1622 = vrsqrt.f32 %v110_v10 }
  0xf7   :  { %v1621_v11 = vpop.eup %1620 }
  0xf8   :  { %v113_v12 = vmul.f32 %v1621_v11, %v98_v0 }
  0xfa   :  { %1447 = vmatpush3.xpose.msk.msra.mxu0 %vm102_vm0, %v113_v12  ;;  %v115_v15 = vmul.f32 %v113_v12, %v113_v12 }
  0xfb   :  { %v1623_v16 = vpop.eup %1622 }
  0xfc   :  { %v117_v18 = vsel %vm102_vm0, %v115_v15, 0.0  ;;  %v114_v19 = vmul.f32 %v1623_v16, %v99_v1 }
  0xfd   :  { %1449 = vmatmul.mubr.msk.f32.vlgmr.msra.gmra.mrb[0].mxu0 %vm102_vm0, %v113_v12  ;;  %118 = vadd.xlane.f32.xlu1 %v117_v18 }
  0xfe   :  { %1452 = vmatpush3.xpose.msk.msra.mxu1 %vm102_vm0, %v114_v19  ;;  %v116_v22 = vmul.f32 %v114_v19, %v114_v19 }
  0xff   :  { %1555 = vmatprep.subr.bf16.mxu1 %v1554_v17 }
 0x100   :  { %v120_v24 = vsel %vm102_vm0, %v116_v22, 0.0 }
 0x101   :  { %1454 = vmatmul.mubr.msk.f32.vlgmr.msra.gmra.mrb[0].mxu1 %vm102_vm0, %v114_v19  ;;  %121 = vadd.xlane.f32.xlu1 %v120_v24 }
 0x102   :  { %1557 = vmatpush3.bf16.msra.mxu1 %v1554_v17  ;;  %1464 = vmatprep.mubr.msk.f32.mxu1 %vm102_vm0, %v113_v12 }
 0x103   :  { %1559 = vmatprep.subr.bf16.mxu1 %v1558_v23 }
 0x106   :  { %1561 = vmatpush3.bf16.msra.mxu1 %v1558_v23 }
 0x107   :  { %1467 = vmatprep.subr.mxu1 %v1795_v6 }
 0x109   :  { %1465 = vmatmul.mubr.msk.f32.vlgmr.msra.gmra.mrb[2].mxu1 %vm102_vm0, %v114_v19 }
 0x10a   :  { %1469 = vmatprep.mubr.msk.f32.mxu1 %vm1796_vm1, %v1795_v6 }
 0x18a   :  { %v119_v25 = vpop.xlane.xlu1 %118 }
 0x18b   :  { %269 = vxpose.xlu0.b32.start.end [1/1] (short) (narrow) %v119_v25, 8 }
 0x18e   :  { %v122_v26 = vpop.xlane.xlu1 %121 }
 0x18f   :  { %301 = vxpose.xlu1.b32.start.end [1/1] (short) (narrow) %v122_v26, 8 }
 0x1d0   :  { %v192_v27 = vpop.f32.mrb[0].mxu0 }
 0x1d1   :  { %v1450_v28 = vpop.f32.mrb[1].mxu0  ;;  %v335_v34 = vmul.f32 2.0, %v192_v27 }
 0x1d4   :  { %v265_v29 = vpop.f32.mrb[0].mxu1 }
 0x1d5   :  { %v1455_v30 = vpop.f32.mrb[1].mxu1  ;;  %v336_v38 = vmul.f32 2.0, %v265_v29 }
 0x1dc   :  { %v1951_v31 = vpop.f32.mrb[2].mxu1 }
 0x1dd   :  { %v529_v32 = vpop.f32.mrb[3].mxu1 }
 0x1de   :  { %1468 = vmatpush3.msra.mxu1 %v529_v32 }
 0x1df   :  { %1472 = vmatprep.subr.mxu1 %v1795_v6 }
 0x20b   :  { %v285_v33 = vpop.trf.xlu0 }
 0x20c   :  { %v333_v35 = vadd.f32 %v285_v33, %v119_v25 }
 0x20e   :  { %v337_v36 = vsub.f32 %v333_v35, %v335_v34 }
 0x20f   :  { %v317_v37 = vpop.trf.xlu1 }
 0x210   :  { %v339_v39 = vmax.f32 %v337_v36, 1e-12  ;;  %v334_v40 = vadd.f32 %v317_v37, %v122_v26  ;;  %v730_v37 = vld [vmem:[#allocation7] sm:$0xff] }
 0x212   :  { %1624 = vrsqrt.f32 %v339_v39  ;;  %v338_v41 = vsub.f32 %v334_v40, %v336_v38  ;;  %vm343_vm2 = vcmp.eq.f32.partialorder %v339_v39, inf  ;;  %v346_v48 = vand.u32 2147483648, %v339_v39  ;;  %v731_v38 = vld [vmem:[#allocation7 + $0x8] sm:$0xff]  ;;  %v732_v40 = vld [vmem:[#allocation7 + $0x10] sm:$0xff] }
 0x213   :  { %vm345_vm4 = vcmp.eq.f32.partialorder %v339_v39, 0.0 }
 0x214   :  { %v340_v42 = vmax.f32 %v338_v41, 1e-12  ;;  %v733_v41 = vld [vmem:[#allocation7 + $0x18] sm:$0xff] }
 0x216   :  { %1626 = vrsqrt.f32 %v340_v42  ;;  %vm350_vm6 = vcmp.eq.f32.partialorder %v340_v42, inf  ;;  %v353_v55 = vand.u32 2147483648, %v340_v42  ;;  %vm352_vm7 = vcmp.eq.f32.partialorder %v340_v42, 0.0 }
 0x21c   :  { %v1625_v46 = vpop.eup %1624 }
 0x21d   :  { %v342_v47 = vmul.f32 %v1625_v46, %v339_v39  ;;  %v736_v46 = vld [vmem:[#allocation7 + $0x30] sm:$0xff] }
 0x21f   :  { %v344_v49 = vsel %vm343_vm2, %v339_v39, %v342_v47  ;;  %v1562_v39 = vpack.c.bf16 %v731_v38, %v730_v37  ;;  %v737_v47 = vld [vmem:[#allocation7 + $0x38] sm:$0xff] }
 0x220   :  { %v1627_v50 = vpop.eup %1626  ;;  %v347_v51 = vsel %vm345_vm4, %v346_v48, %v344_v49  ;;  %v1574_v48 = vpack.c.bf16 %v737_v47, %v736_v46 }
 0x221   :  { %v360_v52 = vsel %vm359_vm3, %v347_v51, 0.0  ;;  %v349_v53 = vmul.f32 %v1627_v50, %v340_v42  ;;  %1563 = vmatprep.subr.bf16.mxu0 %v1562_v39 }
 0x222   :  { %v362_v54 = vmul.f32 -2.0, %v360_v52  ;;  %1565 = vmatpush3.bf16.msra.mxu0 %v1562_v39 }
 0x223   :  { %v351_v56 = vsel %vm350_vm6, %v340_v42, %v349_v53  ;;  %v1566_v42 = vpack.c.bf16 %v733_v41, %v732_v40 }
 0x224   :  { %v365_v57 = vsel %vm364_vm5, %v362_v54, -inf  ;;  %v354_v58 = vsel %vm352_vm7, %v353_v55, %v351_v56  ;;  %v1984_v56 = vld [vmem:[%s2055_s4] ss:$0 sm:$0xff] }
 0x225   :  { %366 = vmax.xlane.f32.xlu0 %v365_v57  ;;  %v361_v59 = vsel %vm359_vm3, %v354_v58, 0.0  ;;  %1567 = vmatprep.subr.bf16.mxu0 %v1566_v42  ;;  %v1989_v58 = vld [vmem:[%s2056_s5] ss:$0 sm:$0xff] }
 0x226   :  { %v363_v60 = vmul.f32 -2.0, %v361_v59  ;;  %1569 = vmatpush3.bf16.msra.mxu0 %v1566_v42 }
 0x227   :  { %1571 = vmatprep.subr.bf16.mxu0 %v1570_v45 }
 0x228   :  { %v368_v61 = vsel %vm364_vm5, %v363_v60, -inf }
 0x229   :  { %369 = vmax.xlane.f32.xlu1 %v368_v61 }
 0x22a   :  { %1573 = vmatpush3.bf16.msra.mxu0 %v1570_v45 }
 0x22b   :  { %1575 = vmatprep.subr.bf16.mxu0 %v1574_v48 }
 0x22e   :  { %1577 = vmatpush3.bf16.msra.mxu0 %v1574_v48 }
 0x22f   :  { %1525 = vmatprep.subr.mxu0 %v1795_v6 }
 0x2b2   :  { %v367_v62 = vpop.xlane.xlu0 %366 }
 0x2b3   :  { %v371_v63 = vsub.f32 %v362_v54, %v367_v62 }
 0x2b5   :  { %v373_v0 = vmul.f32 1.442695, %v371_v63 }
 0x2b6   :  { %v370_v1 = vpop.xlane.xlu1 %369 }
 0x2b7   :  { %1628 = vpow2.f32 %v373_v0  ;;  %v372_v2 = vsub.f32 %v363_v60, %v370_v1 }
 0x2b9   :  { %v375_v3 = vmul.f32 1.442695, %v372_v2 }
 0x2bb   :  { %1630 = vpow2.f32 %v375_v3 }
 0x2c1   :  { %v1629_v4 = vpop.eup %1628 }
 0x2c2   :  { %v377_v5 = vsel %vm364_vm5, %v1629_v4, 0.0 }
 0x2c3   :  { %378 = vadd.xlane.f32.xlu0 %v377_v5 }
 0x2c5   :  { %v1631_v7 = vpop.eup %1630 }
 0x2c6   :  { %v380_v8 = vsel %vm364_vm5, %v1631_v7, 0.0 }
 0x2c7   :  { %381 = vadd.xlane.f32.xlu1 %v380_v8 }
 0x350   :  { %v379_v9 = vpop.xlane.xlu0 %378 }
 0x351   :  { %1632 = vrcp.f32 %v379_v9 }
 0x354   :  { %v382_v10 = vpop.xlane.xlu1 %381 }
 0x355   :  { %1634 = vrcp.f32 %v382_v10 }
 0x35b   :  { %v1633_v11 = vpop.eup %1632 }
 0x35c   :  { %v385_v12 = vmul.f32 %v1633_v11, %v1629_v4 }
 0x35e   :  { %vm387_vm8 = vcmp.gt.f32.partialorder %v385_v12, 0.01 }
 0x35f   :  { %v1635_v13 = vpop.eup %1634  ;;  %vm389_vm9 = vmand %vm387_vm8, %vm359_vm3 }
 0x360   :  { %v391_v14 = vsel %vm389_vm9, %v385_v12, 0.0  ;;  %v386_v15 = vmul.f32 %v1635_v13, %v1631_v7 }
 0x361   :  { %393 = vxpose.xlu0.b32.start.end [1/1] (short) (narrow) %v391_v14, 8 }
 0x362   :  { %vm388_vm10 = vcmp.gt.f32.partialorder %v386_v15, 0.01 }
 0x363   :  { %vm390_vm11 = vmand %vm388_vm10, %vm359_vm3 }
 0x364   :  { %v392_v16 = vsel %vm390_vm11, %v386_v15, 0.0 }
 0x365   :  { %425 = vxpose.xlu1.b32.start.end [1/1] (short) (narrow) %v392_v16, 8 }
 0x3e1   :  { %v1962_v17 = vpop.trf.xlu0 }
 0x3e2   :  { %1470 = vmatmul.mubr.msk.f32.vlgmr.msra.gmra.mrb[4].mxu1 %vm364_vm5, %v1962_v17 }
 0x3e3   :  { %1473 = vmatpush3.msra.mxu1 %v1951_v31  ;;  %1474 = vmatprep.mubr.msk.f32.mxu1 %vm1796_vm1, %v1795_v6 }
 0x3e4   :  { %1496 = vmatprep.subr.mxu1 %v1795_v6 }
 0x3e5   :  { %v1970_v18 = vpop.trf.xlu1 }
 0x3e6   :  { %1475 = vmatmul.mubr.msk.f32.vlgmr.msra.gmra.mrb[6].mxu1 %vm364_vm5, %v1970_v18 }
 0x3e7   :  { %1498 = vmatprep.mubr.msk.f32.mxu1 %vm1796_vm1, %v1795_v6 }
 0x4b5   :  { %v607_v19 = vpop.f32.mrb[4].mxu1 }
 0x4b6   :  { %v684_v20 = vmul.f32 0.1, %v607_v19  ;;  %v1471_v21 = vpop.f32.mrb[5].mxu1 }
 0x4b8   :  { %v687_v22 = vsel %vm686_vm12, %v684_v20, 0.0 }
 0x4b9   :  { %688 = vadd.xlane.f32.xlu0 %v687_v22  ;;  %v680_v23 = vpop.f32.mrb[6].mxu1 }
 0x4ba   :  { %v685_v24 = vmul.f32 0.1, %v680_v23  ;;  %v1476_v25 = vpop.f32.mrb[7].mxu1 }
 0x4bc   :  { %v690_v26 = vsel %vm686_vm12, %v685_v24, 0.0 }
 0x4bd   :  { %691 = vadd.xlane.f32.xlu1 %v690_v26  ;;  %v993_v26 = vld [vmem:[#allocation8] sm:$0xff] }
 0x546   :  { %v689_v27 = vpop.xlane.xlu0 %688 }
 0x547   :  { %v694_v28 = vmul.f32 0.015625, %v689_v27  ;;  %v994_v27 = vld [vmem:[#allocation8 + $0x8] sm:$0xff] }
 0x549   :  { %v696_v29 = vsub.f32 %v684_v20, %v694_v28  ;;  %v1578_v28 = vpack.c.bf16 %v994_v27, %v993_v26 }
 0x54a   :  { %v692_v30 = vpop.xlane.xlu1 %691 }
 0x54b   :  { %v695_v31 = vmul.f32 0.015625, %v692_v30  ;;  %v698_v32 = vmul.f32 %v696_v29, %v696_v29  ;;  %v996_v30 = vld [vmem:[#allocation8 + $0x18] sm:$0xff] }
 0x54d   :  { %v697_v33 = vsub.f32 %v685_v24, %v695_v31  ;;  %v700_v34 = vsel %vm686_vm12, %v698_v32, 0.0  ;;  %v997_v32 = vld [vmem:[#allocation8 + $0x20] sm:$0xff] }
 0x54e   :  { %701 = vadd.xlane.f32.xlu0 %v700_v34 }
 0x54f   :  { %v699_v35 = vmul.f32 %v697_v33, %v697_v33 }
 0x551   :  { %v703_v36 = vsel %vm686_vm12, %v699_v35, 0.0  ;;  %v999_v35 = vld [vmem:[#allocation8 + $0x30] sm:$0xff] }
 0x552   :  { %704 = vadd.xlane.f32.xlu1 %v703_v36  ;;  %v1000_v36 = vld [vmem:[#allocation8 + $0x38] sm:$0xff] }
 0x553   :  { %v1590_v37 = vpack.c.bf16 %v1000_v36, %v999_v35 }
 0x5db   :  { %v702_v49 = vpop.xlane.xlu0 %701 }
 0x5dc   :  { %v706_v50 = vmul.f32 0.015625, %v702_v49 }
 0x5de   :  { %v708_v51 = vadd.f32 1e-05, %v706_v50 }
 0x5df   :  { %v705_v52 = vpop.xlane.xlu1 %704 }
 0x5e0   :  { %1636 = vrsqrt.f32 %v708_v51  ;;  %v707_v53 = vmul.f32 0.015625, %v705_v52 }
 0x5e2   :  { %v709_v54 = vadd.f32 1e-05, %v707_v53 }
 0x5e4   :  { %1638 = vrsqrt.f32 %v709_v54 }
 0x5ea   :  { %v1637_v55 = vpop.eup %1636 }
 0x5eb   :  { %v712_v57 = vmul.f32 %v1637_v55, %v696_v29  ;;  %v995_v29 = vld [vmem:[#allocation8 + $0x10] sm:$0xff] }
 0x5ec   :  { %v1582_v31 = vpack.c.bf16 %v996_v30, %v995_v29 }
 0x5ed   :  { %v720_v59 = vmul.f32 %v1984_v56, %v712_v57 }
 0x5ee   :  { %v1639_v60 = vpop.eup %1638 }
 0x5ef   :  { %v713_v61 = vmul.f32 %v1639_v60, %v697_v33  ;;  %v728_v62 = vadd.f32 %v1989_v58, %v720_v59  ;;  %v998_v33 = vld [vmem:[#allocation8 + $0x28] sm:$0xff] }
 0x5f0   :  { %v1586_v34 = vpack.c.bf16 %v998_v33, %v997_v32 }
 0x5f1   :  { %1493 = vmatprep.mubr.msk.f32.mxu0 %vm686_vm12, %v728_v62  ;;  %v721_v63 = vmul.f32 %v1984_v56, %v713_v61 }
 0x5f3   :  { %v729_v0 = vadd.f32 %v1989_v58, %v721_v63 }
 0x5f5   :  { %1494 = vmatmul.mubr.msk.f32.vlgmr.msra.gmra.mrb[2].mxu0 %vm686_vm12, %v729_v0 }
 0x5f6   :  { %1527 = vmatprep.mubr.msk.f32.mxu0 %vm1796_vm1, %v1795_v6 }
 0x6c8   :  { %v1495_v1 = vpop.f32.mrb[2].mxu0 }
 0x6c9   :  { %v810_v2 = vpop.f32.mrb[3].mxu0 }
 0x6ca   :  { %1497 = vmatpush3.msra.mxu1 %v810_v2 }
 0x6cb   :  { %1499 = vmatmul.mubr.msk.f32.vlgmr.msra.gmra.mrb[8].mxu1 %vm364_vm5, %v1962_v17  ;;  %1501 = vmatprep.subr.mxu1 %v1795_v6 }
 0x6cc   :  { %1502 = vmatpush3.msra.mxu1 %v1495_v1  ;;  %1503 = vmatprep.mubr.msk.f32.mxu1 %vm1796_vm1, %v1795_v6 }
 0x6cd   :  { %1579 = vmatprep.subr.bf16.mxu1 %v1578_v28 }
 0x6cf   :  { %1504 = vmatmul.mubr.msk.f32.vlgmr.msra.gmra.mrb[10].mxu1 %vm364_vm5, %v1970_v18 }
 0x6d0   :  { %1581 = vmatpush3.bf16.msra.mxu1 %v1578_v28 }
 0x6d1   :  { %1583 = vmatprep.subr.bf16.mxu1 %v1582_v31 }
 0x6d4   :  { %1585 = vmatpush3.bf16.msra.mxu1 %v1582_v31 }
 0x6d5   :  { %1587 = vmatprep.subr.bf16.mxu1 %v1586_v34 }
 0x6d8   :  { %1589 = vmatpush3.bf16.msra.mxu1 %v1586_v34 }
 0x6d9   :  { %1591 = vmatprep.subr.bf16.mxu1 %v1590_v37 }
 0x6dc   :  { %1593 = vmatpush3.bf16.msra.mxu1 %v1590_v37 }
 0x79e   :  { %v885_v3 = vpop.f32.mrb[8].mxu1 }
 0x79f   :  { %v959_v4 = vmul.f32 0.1, %v885_v3  ;;  %v1500_v5 = vpop.f32.mrb[9].mxu1 }
 0x7a1   :  { %v961_v7 = vadd.f32 %v959_v4, %v728_v62 }
 0x7a2   :  { %v955_v8 = vpop.f32.mrb[10].mxu1 }
 0x7a3   :  { %v960_v9 = vmul.f32 0.1, %v955_v8  ;;  %v1505_v10 = vpop.f32.mrb[11].mxu1  ;;  %v963_v11 = vsel %vm686_vm12, %v961_v7, 0.0 }
 0x7a4   :  { %964 = vadd.xlane.f32.xlu0 %v963_v11  ;;  %v1256_v10 = vld [vmem:[#allocation10] sm:$0xff]  ;;  %v1257_v11 = vld [vmem:[#allocation10 + $0x8] sm:$0xff] }
 0x7a5   :  { %v962_v12 = vadd.f32 %v960_v9, %v729_v0 }
 0x7a7   :  { %v966_v13 = vsel %vm686_vm12, %v962_v12, 0.0 }
 0x7a8   :  { %967 = vadd.xlane.f32.xlu1 %v966_v13  ;;  %v1258_v13 = vld [vmem:[#allocation10 + $0x10] sm:$0xff] }
 0x831   :  { %v965_v14 = vpop.xlane.xlu0 %964 }
 0x832   :  { %v969_v15 = vmul.f32 0.015625, %v965_v14  ;;  %v1259_v14 = vld [vmem:[#allocation10 + $0x18] sm:$0xff] }
 0x834   :  { %v971_v16 = vsub.f32 %v961_v7, %v969_v15  ;;  %v1598_v15 = vpack.c.bf16 %v1259_v14, %v1258_v13 }
 0x835   :  { %v968_v19 = vpop.xlane.xlu1 %967 }
 0x836   :  { %v970_v20 = vmul.f32 0.015625, %v968_v19  ;;  %v973_v21 = vmul.f32 %v971_v16, %v971_v16  ;;  %v1261_v19 = vld [vmem:[#allocation10 + $0x28] sm:$0xff] }
 0x838   :  { %v972_v22 = vsub.f32 %v962_v12, %v970_v20  ;;  %v975_v23 = vsel %vm686_vm12, %v973_v21, 0.0  ;;  %v1594_v12 = vpack.c.bf16 %v1257_v11, %v1256_v10  ;;  %v1262_v21 = vld [vmem:[#allocation10 + $0x30] sm:$0xff] }
 0x839   :  { %976 = vadd.xlane.f32.xlu0 %v975_v23 }
 0x83a   :  { %v974_v24 = vmul.f32 %v972_v22, %v972_v22 }
 0x83c   :  { %v978_v25 = vsel %vm686_vm12, %v974_v24, 0.0 }
 0x83d   :  { %979 = vadd.xlane.f32.xlu1 %v978_v25 }
 0x8c6   :  { %v977_v38 = vpop.xlane.xlu0 %976 }
 0x8c7   :  { %v981_v39 = vmul.f32 0.015625, %v977_v38  ;;  %v1391_v38 = vld [vmem:[%s2058_s7] ss:$0 sm:$0xff] }
 0x8c9   :  { %v983_v40 = vadd.f32 1e-05, %v981_v39 }
 0x8ca   :  { %v980_v41 = vpop.xlane.xlu1 %979 }
 0x8cb   :  { %1640 = vrsqrt.f32 %v983_v40  ;;  %v982_v42 = vmul.f32 0.015625, %v980_v41 }
 0x8cd   :  { %v984_v43 = vadd.f32 1e-05, %v982_v42 }
 0x8cf   :  { %1642 = vrsqrt.f32 %v984_v43 }
 0x8d5   :  { %v1641_v44 = vpop.eup %1640 }
 0x8d6   :  { %v987_v45 = vmul.f32 %v1641_v44, %v971_v16  ;;  %v1260_v16 = vld [vmem:[#allocation10 + $0x20] sm:$0xff] }
 0x8d7   :  { %v1602_v20 = vpack.c.bf16 %v1261_v19, %v1260_v16 }
 0x8d8   :  { %v989_v46 = vmul.f32 %v1984_v56, %v987_v45 }
 0x8d9   :  { %v1643_v47 = vpop.eup %1642 }
 0x8da   :  { %v988_v48 = vmul.f32 %v1643_v47, %v972_v22  ;;  %v991_v49 = vadd.f32 %v1989_v58, %v989_v46  ;;  %v1263_v22 = vld [vmem:[#allocation10 + $0x38] sm:$0xff] }
 0x8db   :  { %v1606_v23 = vpack.c.bf16 %v1263_v22, %v1262_v21 }
 0x8dc   :  { %1522 = vmatprep.mubr.msk.f32.mxu1 %vm686_vm12, %v991_v49  ;;  %v990_v50 = vmul.f32 %v1984_v56, %v988_v48 }
 0x8de   :  { %v992_v51 = vadd.f32 %v1989_v58, %v990_v50 }
 0x8e0   :  { %1523 = vmatmul.mubr.msk.f32.vlgmr.msra.gmra.mrb[12].mxu1 %vm686_vm12, %v992_v51 }
 0x9b3   :  { %v1524_v52 = vpop.f32.mrb[12].mxu1 }
 0x9b4   :  { %v1073_v53 = vpop.f32.mrb[13].mxu1 }
 0x9b5   :  { %1526 = vmatpush3.msra.mxu0 %v1073_v53 }
 0x9b6   :  { %1528 = vmatmul.mubr.msk.f32.vlgmr.msra.gmra.mrb[4].mxu0 %vm364_vm5, %v1962_v17  ;;  %1530 = vmatprep.subr.mxu0 %v1795_v6 }
 0x9b7   :  { %1531 = vmatpush3.msra.mxu0 %v1524_v52  ;;  %1532 = vmatprep.mubr.msk.f32.mxu0 %vm1796_vm1, %v1795_v6 }
 0x9b8   :  { %1595 = vmatprep.subr.bf16.mxu0 %v1594_v12 }
 0x9ba   :  { %1533 = vmatmul.mubr.msk.f32.vlgmr.msra.gmra.mrb[6].mxu0 %vm364_vm5, %v1970_v18 }
 0x9bb   :  { %1597 = vmatpush3.bf16.msra.mxu0 %v1594_v12 }
 0x9bc   :  { %1599 = vmatprep.subr.bf16.mxu0 %v1598_v15 }
 0x9bf   :  { %1601 = vmatpush3.bf16.msra.mxu0 %v1598_v15 }
 0x9c0   :  { %1603 = vmatprep.subr.bf16.mxu0 %v1602_v20 }
 0x9c3   :  { %1605 = vmatpush3.bf16.msra.mxu0 %v1602_v20 }
 0x9c4   :  { %1607 = vmatprep.subr.bf16.mxu0 %v1606_v23 }
 0x9c7   :  { %1609 = vmatpush3.bf16.msra.mxu0 %v1606_v23 }
 0xa89   :  { %v1148_v54 = vpop.f32.mrb[4].mxu0 }
 0xa8a   :  { %v1222_v55 = vmul.f32 0.1, %v1148_v54  ;;  %v1529_v57 = vpop.f32.mrb[5].mxu0 }
 0xa8c   :  { %v1224_v59 = vadd.f32 %v1222_v55, %v991_v49 }
 0xa8d   :  { %v1218_v60 = vpop.f32.mrb[6].mxu0 }
 0xa8e   :  { %v1223_v61 = vmul.f32 0.1, %v1218_v60  ;;  %v1534_v62 = vpop.f32.mrb[7].mxu0  ;;  %v1226_v63 = vsel %vm686_vm12, %v1224_v59, 0.0 }
 0xa8f   :  { %1227 = vadd.xlane.f32.xlu0 %v1226_v63 }
 0xa90   :  { %v1225_v17 = vadd.f32 %v1223_v61, %v992_v51 }
 0xa92   :  { %v1229_v0 = vsel %vm686_vm12, %v1225_v17, 0.0 }
 0xa93   :  { %1230 = vadd.xlane.f32.xlu1 %v1229_v0 }
 0xb1c   :  { %v1228_v1 = vpop.xlane.xlu0 %1227 }
 0xb1d   :  { %v1232_v2 = vmul.f32 0.015625, %v1228_v1 }
 0xb1f   :  { %v1234_v6 = vsub.f32 %v1224_v59, %v1232_v2 }
 0xb20   :  { %v1231_v3 = vpop.xlane.xlu1 %1230 }
 0xb21   :  { %v1233_v4 = vmul.f32 0.015625, %v1231_v3  ;;  %v1236_v18 = vmul.f32 %v1234_v6, %v1234_v6 }
 0xb23   :  { %v1235_v5 = vsub.f32 %v1225_v17, %v1233_v4  ;;  %v1238_v7 = vsel %vm686_vm12, %v1236_v18, 0.0 }
 0xb24   :  { %1239 = vadd.xlane.f32.xlu0 %v1238_v7 }
 0xb25   :  { %v1237_v8 = vmul.f32 %v1235_v5, %v1235_v5 }
 0xb27   :  { %v1241_v9 = vsel %vm686_vm12, %v1237_v8, 0.0 }
 0xb28   :  { %1242 = vadd.xlane.f32.xlu1 %v1241_v9 }
 0xbb1   :  { %v1240_v24 = vpop.xlane.xlu0 %1239 }
 0xbb2   :  { %v1244_v25 = vmul.f32 0.015625, %v1240_v24 }
 0xbb4   :  { %v1246_v26 = vadd.f32 1e-05, %v1244_v25 }
 0xbb5   :  { %v1243_v27 = vpop.xlane.xlu1 %1242 }
 0xbb6   :  { %1644 = vrsqrt.f32 %v1246_v26  ;;  %v1245_v28 = vmul.f32 0.015625, %v1243_v27 }
 0xbb8   :  { %v1247_v29 = vadd.f32 1e-05, %v1245_v28 }
 0xbba   :  { %1646 = vrsqrt.f32 %v1247_v29 }
 0xbc0   :  { %v1645_v30 = vpop.eup %1644 }
 0xbc1   :  { %v1250_v31 = vmul.f32 %v1645_v30, %v1234_v6 }
 0xbc3   :  { %v1252_v32 = vmul.f32 %v1984_v56, %v1250_v31 }
 0xbc4   :  { %v1647_v33 = vpop.eup %1646 }
 0xbc5   :  { %v1251_v34 = vmul.f32 %v1647_v33, %v1235_v5  ;;  %v1254_v35 = vadd.f32 %v1989_v58, %v1252_v32 }
 0xbc7   :  { %v1253_v36 = vmul.f32 %v1984_v56, %v1251_v34  ;;  %1551 = vmatprep.mubr.msk.f32.mxu0 %vm686_vm12, %v1254_v35 }
 0xbc9   :  { %v1255_v37 = vadd.f32 %v1989_v58, %v1253_v36 }
 0xbcb   :  { %1552 = vmatmul.mubr.msk.f32.vlgmr.msra.gmra.mrb[8].mxu0 %vm686_vm12, %v1255_v37 }
 0xc9e   :  { %v1553_v39 = vpop.f32.mrb[8].mxu0 }
 0xc9f   :  { %v1349_v40 = vadd.f32 %v1553_v39, %v1391_v38  ;;  %v1343_v41 = vpop.f32.mrb[9].mxu0 }
 0xca0   :  { %v1344_v42 = vadd.f32 %v1391_v38, %v1343_v41 }
 0xca1   :  { %1353 = vst [vmem:[#allocation11 + $0x8] sm:$0xff] %v1349_v40 }
 0xca2   :  { %1352 = vst [vmem:[#allocation11] sm:$0xff] %v1344_v42 }
 0xca3   :  { %1769 = shalt.err (!%p1766_p2)
}
 0xca4   :  { %s1770_s7 = scalar_lea.hbm %s2059_s8, 256 }
 0xca5   :  { %p1771_p3 = scmp.ne.s32.totalorder %s2059_s8, %s1770_s7  ;;  %p1774_p4 = scmp.lt.u32.totalorder %s1770_s7, %s2059_s8 }
 0xca7   :  { %p1776_p5 = pnand %p1774_p4, %p1771_p3 }
 0xca9   :  { %1779 = shalt.err (!%p1776_p5)
}
 0xcaa   :  { %1365 = dma.vmem_to_hbm [thread:$0]  %s1360_s25, 256, %s2059_s8, [#allocation4], %s1790_s17, %s1790_s17, %s1791_s18  }
 0xcab   :  { %1786 = dma.done.wait [#allocation4], 256  }
 0xcac   :  { %1787 = vsyncadd [#allocation4], 4294967040 }
 0xcad   :  { %1369 = vsyncpa [#allocation3], 1 }
 0xcae   :  { %1370 = vsyncpa [#allocation6], 1 }
 0xcaf   :  { %1371 = vsyncpa [#allocation9], 1 }
 0xcb0   :  { %1372 = vsyncpa [#allocation4], 1 }

</bundles_post_ra>
